<compile_context>
chip_gen: v5e
topology: v5e:2x2
jax: 0.10.0
libtpu: 0.0.40
codegen_flags: <defaults>
</compile_context>

<pallas_src>
import itertools
import math

import jax
import jax.numpy as jnp
from jax import lax
from jax.experimental import pallas as pl
from jax.experimental.pallas import tpu as pltpu


def _pairwise_gram_kernel(p_ref, t_ref, pt_ref, pp_ref, tt_ref):
    """Accumulate pairwise <p_i,t_j>, ||p_i||^2, ||t_j||^2 over time tiles.

    Blocks (leading batch-group dim squeezed away):
      p_ref, t_ref : (BS, Tk)  with BS = Bt * S (Bt batch items folded into rows)
      pt_ref       : (BS, BS)  f32, resident across the K axis (accumulator)
      pp_ref/tt_ref: (BS, 1)   f32
    """
    k = pl.program_id(1)

    @pl.when(k == 0)
    def _():
        pt_ref[...] = jnp.zeros_like(pt_ref)
        pp_ref[...] = jnp.zeros_like(pp_ref)
        tt_ref[...] = jnp.zeros_like(tt_ref)

    p = p_ref[...]                       # (BS, Tk), native dtype
    t = t_ref[...]
    # Pairwise dot products over time -> single MXU matmul per time tile.
    dn = (((1,), (1,)), ((), ()))
    pt_ref[...] += lax.dot_general(p, t, dn, preferred_element_type=jnp.float32)
    # Norms via VPU squares + lane (XLU) reductions, not ones-row matmuls.
    # TODO(synk): if the bundle shows the astype materializing a full (BS, Tk)
    #             f32 copy, chunk this reduction over Tk sub-slices.
    p32 = p.astype(jnp.float32)
    t32 = t.astype(jnp.float32)
    pp_ref[...] += jnp.sum(p32 * p32, axis=-1, keepdims=True)   # (BS, 1)
    tt_ref[...] += jnp.sum(t32 * t32, axis=-1, keepdims=True)   # (BS, 1)


def _tpu_tuning():
    """Return (max_rows, num_cores, vmem_limit_bytes, input_budget_bytes)."""
    kind = ""
    try:
        kind = jax.devices()[0].device_kind.lower()
    except Exception:
        pass
    is_v5e = ("v5 lite" in kind) or ("v5lite" in kind) or ("v5e" in kind)
    # v5e MXU is 4x128x128 -> M=N=128 is the sweet spot; v6e/v7x are 2x256x256.
    max_rows = 128 if is_v5e else 256
    # Chips with 2 TensorCores sharing the chip (v4 megacore, v5p, v7x): make
    # sure the "parallel" grid axis gets >= 2 iterations so both TCs work.
    num_cores = 2 if (not is_v5e) and any(s in kind for s in ("v7", "7x", "v4", "v5p")) else 1
    # Conservative default fits v7x's 64 MiB physical VMEM; raise when known.
    vmem_limit = 48 * 1024 * 1024
    try:
        phys = int(pltpu.get_tpu_info().vmem_capacity_bytes)
        vmem_limit = min(phys * 3 // 4, 96 * 1024 * 1024)
    except Exception:
        pass
    input_budget = vmem_limit // 2       # 2 inputs x 2 pipeline buffers
    return max_rows, num_cores, vmem_limit, input_budget


def pairwise_sisdr(preds, target):
    """metric_mtx[b, i, j] = SI-SDR(preds[b, i], target[b, j]) -> (B, S, S) f32."""
    B, S, T = preds.shape
    itemsize = jnp.dtype(preds.dtype).itemsize
    max_rows, num_cores, vmem_limit, input_budget = _tpu_tuning()
    TK_MAX = 32768                       # capped by the per-chip VMEM budget below

    # Sublane multiple for the (rows, time) input blocks: f32->8, bf16->16.
    sub = max(8, 32 // max(1, itemsize))
    m = sub // math.gcd(S, sub)          # smallest Bt with (Bt*S) % sub == 0
    if B * S <= max_rows:
        Bt = B                           # single batch group (full-dim escape)
        if num_cores > 1:                # v7x: give the 'parallel' axis >= 2 steps
            bt_split = (pl.cdiv(B, num_cores) // m) * m
            if bt_split >= m and pl.cdiv(B, bt_split) >= num_cores:
                Bt = bt_split
    else:
        Bt = max(m, ((max_rows // S) // m) * m)
    Bg = pl.cdiv(B, Bt)
    B_pad = Bg * Bt
    BS = Bt * S

    tk_cap = max(128, (input_budget // (4 * BS * itemsize)) // 128 * 128)
    Tk = min(TK_MAX, tk_cap, pl.cdiv(T, 128) * 128)
    Kg = pl.cdiv(T, Tk)
    T_pad = Kg * Tk

    # Flatten (B, S) into the matmul M/N dim at the JAX level (free reshape).
    # TODO(synk): optionally cast to bfloat16 here (kernel is HBM-BW bound) once
    #             the precision trade-off for the metric is signed off.
    p2 = preds.reshape(B * S, T)
    t2 = target.reshape(B * S, T)
    if B_pad != B or T_pad != T:
        pad = ((0, (B_pad - B) * S), (0, T_pad - T))
        p2 = jnp.pad(p2, pad)            # zero pad: exact for dots and norms
        t2 = jnp.pad(t2, pad)

    pt, pp, tt = pl.pallas_call(
        _pairwise_gram_kernel,
        out_shape=(
            jax.ShapeDtypeStruct((Bg, BS, BS), jnp.float32),
            jax.ShapeDtypeStruct((Bg, BS, 1), jnp.float32),
            jax.ShapeDtypeStruct((Bg, BS, 1), jnp.float32),
        ),
        grid_spec=pltpu.PrefetchScalarGridSpec(
            num_scalar_prefetch=0,
            grid=(Bg, Kg),
            in_specs=[
                pl.BlockSpec((BS, Tk), lambda b, k: (b, k)),
                pl.BlockSpec((BS, Tk), lambda b, k: (b, k)),
            ],
            out_specs=[
                pl.BlockSpec((None, BS, BS), lambda b, k: (b, 0, 0)),
                pl.BlockSpec((None, BS, 1), lambda b, k: (b, 0, 0)),
                pl.BlockSpec((None, BS, 1), lambda b, k: (b, 0, 0)),
            ],
        ),
        compiler_params=pltpu.CompilerParams(
            dimension_semantics=("parallel", "arbitrary"),
            vmem_limit_bytes=int(vmem_limit),
        ),
    )(p2, t2)

    # ---- tiny SI-SDR epilogue in XLA (keeps kernel stores lane-dense) --------
    # Gather the Bt per-batch SxS diagonal blocks of each (BS, BS) Gram slab.
    pt5 = pt.reshape(Bg, Bt, S, Bt, S)
    pt5 = jnp.transpose(pt5, (0, 2, 4, 1, 3))             # (Bg, S, S, Bt, Bt)
    pt_d = jnp.diagonal(pt5, axis1=3, axis2=4)            # (Bg, S, S, Bt)
    pt_d = jnp.transpose(pt_d, (0, 3, 1, 2)).reshape(B_pad, S, S)[:B]
    pp_b = pp.reshape(B_pad, S)[:B]                       # ||p_i||^2 -> (B, S)
    tt_b = tt.reshape(B_pad, S)[:B]                       # ||t_j||^2 -> (B, S)

    # SI-SDR, torchmetrics convention (zero_mean=False):
    #   alpha      = (<p,t> + eps) / (||t||^2 + eps)
    #   sisdr(i,j) = 10*log10((||alpha*t_j||^2 + eps) / (||alpha*t_j - p_i||^2 + eps))
    eps = jnp.float32(jnp.finfo(jnp.float32).eps)
    tt_row = tt_b[:, None, :]                             # over target index j
    pp_col = pp_b[:, :, None]                             # over pred index i
    alpha = (pt_d + eps) / (tt_row + eps)                 # (B, S, S)
    tgt_e = alpha * alpha * tt_row
    noise_e = tgt_e - 2.0 * alpha * pt_d + pp_col
    # Guard against f32 cancellation making the residual slightly negative.
    # TODO(synk): the Gram expansion caps reportable SI-SDR (~60-80 dB) vs the
    #             time-domain residual torchmetrics forms; fine for the PIT argmax.
    noise_e = jnp.maximum(noise_e, 0.0)
    return 10.0 * jnp.log10((tgt_e + eps) / (noise_e + eps))


def base_pit_metric(preds, target):
    """Mirrors BasePITMetric.forward: PIT(SI-SDR, eval='max'), averaged over batch."""
    assert preds.shape == target.shape
    # TODO(synk): the torch module asserts `not torch.all(preds == 0)`; that eager
    # check forces a device->host sync (and breaks under jit), so it is omitted here.
    if preds.ndim <= 1:
        preds = preds[None, None]
    if target.ndim <= 1:
        target = target[None, None]

    B, S, T = preds.shape
    metric_mtx = pairwise_sisdr(preds, target)               # (B, S, S)

    # Exhaustive permutation search (S! is tiny for speech separation), eval = max.
    perms = jnp.asarray(list(itertools.permutations(range(S))),
                        dtype=jnp.int32)                     # (P, S)
    idx_s = jnp.arange(S, dtype=jnp.int32)[None, :]          # (1, S)
    per_perm = metric_mtx[:, idx_s, perms]                   # (B, P, S)
    scores = per_perm.mean(axis=-1)                          # (B, P)
    best_metric = scores.max(axis=-1)                        # (B,)
    return best_metric.mean()                                # scalar, like PIT forward


if __name__ == "__main__":
    key = jax.random.PRNGKey(0)
    kp, kt = jax.random.split(key)
    B, S, T = 2, 3, 128
    preds = jax.random.normal(kp, (B, S, T), dtype=jnp.float32)
    target = jax.random.normal(kt, (B, S, T), dtype=jnp.float32)

    out = base_pit_metric(preds, target)
    jax.block_until_ready(out)
    print("KERNEL_OK")
</pallas_src>

<mosaic_0001>
module attributes {stable_mosaic.version = 11 : i64} {
  func.func @_pairwise_gram_kernel(%arg0: i32, %arg1: i32, %arg2: memref<6x128xf32, #tpu.memory_space<vmem>>, %arg3: memref<6x128xf32, #tpu.memory_space<vmem>>, %arg4: memref<1x6x6xf32, #tpu.memory_space<vmem>>, %arg5: memref<1x6x1xf32, #tpu.memory_space<vmem>>, %arg6: memref<1x6x1xf32, #tpu.memory_space<vmem>>) attributes {dimension_semantics = [#tpu.dimension_semantics<parallel>, #tpu.dimension_semantics<arbitrary>], iteration_bounds = array<i64: 1, 1>, scalar_prefetch = 0 : i64, scratch_operands = 0 : i64, tpu.core_type = #tpu.core_type<tc>, window_params = [{transform_indices = @transform_0, window_bounds = array<i64: 6, 128>}, {transform_indices = @transform_1, window_bounds = array<i64: 6, 128>}, {transform_indices = @transform_2, window_bounds = array<i64: 1, 6, 6>}, {transform_indices = @transform_3, window_bounds = array<i64: 1, 6, 1>}, {transform_indices = @transform_4, window_bounds = array<i64: 1, 6, 1>}]} {
    %c0_i32 = arith.constant 0 : i32
    %0 = arith.cmpi eq, %arg1, %c0_i32 : i32
    %1 = arith.extui %0 : i1 to i32
    %c0_i32_0 = arith.constant 0 : i32
    %2 = arith.cmpi ne, %1, %c0_i32_0 : i32
    scf.if %2 {
      %cst_24 = arith.constant 0.000000e+00 : f32
      %30 = vector.broadcast %cst_24 : f32 to vector<6x6xf32>
      %c0_25 = arith.constant 0 : index
      %c0_26 = arith.constant 0 : index
      %c0_27 = arith.constant 0 : index
      %31 = vector.load %arg4[%c0_25, %c0_26, %c0_27] : memref<1x6x6xf32, #tpu.memory_space<vmem>>, vector<1x6x6xf32>
      %32 = vector.shape_cast %31 : vector<1x6x6xf32> to vector<6x6xf32>
      %33 = vector.shape_cast %30 : vector<6x6xf32> to vector<1x6x6xf32>
      tpu.vector_store %arg4[%c0_25, %c0_26, %c0_27], %33 {strides = array<i32>} : memref<1x6x6xf32, #tpu.memory_space<vmem>>, vector<1x6x6xf32>,
      %cst_28 = arith.constant 0.000000e+00 : f32
      %34 = vector.broadcast %cst_28 : f32 to vector<6x1xf32>
      %c0_29 = arith.constant 0 : index
      %c0_30 = arith.constant 0 : index
      %c0_31 = arith.constant 0 : index
      %35 = vector.load %arg5[%c0_29, %c0_30, %c0_31] : memref<1x6x1xf32, #tpu.memory_space<vmem>>, vector<1x6x1xf32>
      %36 = vector.shape_cast %35 : vector<1x6x1xf32> to vector<6x1xf32>
      %37 = vector.shape_cast %34 : vector<6x1xf32> to vector<1x6x1xf32>
      tpu.vector_store %arg5[%c0_29, %c0_30, %c0_31], %37 {strides = array<i32>} : memref<1x6x1xf32, #tpu.memory_space<vmem>>, vector<1x6x1xf32>,
      %cst_32 = arith.constant 0.000000e+00 : f32
      %38 = vector.broadcast %cst_32 : f32 to vector<6x1xf32>
      %c0_33 = arith.constant 0 : index
      %c0_34 = arith.constant 0 : index
      %c0_35 = arith.constant 0 : index
      %39 = vector.load %arg6[%c0_33, %c0_34, %c0_35] : memref<1x6x1xf32, #tpu.memory_space<vmem>>, vector<1x6x1xf32>
      %40 = vector.shape_cast %39 : vector<1x6x1xf32> to vector<6x1xf32>
      %41 = vector.shape_cast %38 : vector<6x1xf32> to vector<1x6x1xf32>
      tpu.vector_store %arg6[%c0_33, %c0_34, %c0_35], %41 {strides = array<i32>} : memref<1x6x1xf32, #tpu.memory_space<vmem>>, vector<1x6x1xf32>,
    } else {
    }
    %c0 = arith.constant 0 : index
    %c0_1 = arith.constant 0 : index
    %3 = vector.load %arg2[%c0, %c0_1] : memref<6x128xf32, #tpu.memory_space<vmem>>, vector<6x128xf32>
    %c0_2 = arith.constant 0 : index
    %c0_3 = arith.constant 0 : index
    %4 = vector.load %arg3[%c0_2, %c0_3] : memref<6x128xf32, #tpu.memory_space<vmem>>, vector<6x128xf32>
    %c0_4 = arith.constant 0 : index
    %c0_5 = arith.constant 0 : index
    %c0_6 = arith.constant 0 : index
    %5 = vector.load %arg4[%c0_4, %c0_5, %c0_6] : memref<1x6x6xf32, #tpu.memory_space<vmem>>, vector<1x6x6xf32>
    %6 = vector.shape_cast %5 : vector<1x6x6xf32> to vector<6x6xf32>
    %cst = arith.constant dense<0.000000e+00> : vector<6x6xf32>
    %7 = tpu.matmul %3, %4, %cst {dimension_numbers = #tpu.dot_dimension_numbers<[1], [1], [0], [0], [0, 0, 1, 0], [], []>} : vector<6x128xf32>, vector<6x128xf32>, vector<6x6xf32> -> vector<6x6xf32>
    %8 = arith.addf %6, %7 : vector<6x6xf32>
    %c0_7 = arith.constant 0 : index
    %c0_8 = arith.constant 0 : index
    %c0_9 = arith.constant 0 : index
    %9 = vector.load %arg4[%c0_7, %c0_8, %c0_9] : memref<1x6x6xf32, #tpu.memory_space<vmem>>, vector<1x6x6xf32>
    %10 = vector.shape_cast %9 : vector<1x6x6xf32> to vector<6x6xf32>
    %11 = vector.shape_cast %8 : vector<6x6xf32> to vector<1x6x6xf32>
    tpu.vector_store %arg4[%c0_7, %c0_8, %c0_9], %11 {strides = array<i32>} : memref<1x6x6xf32, #tpu.memory_space<vmem>>, vector<1x6x6xf32>,
    %c0_10 = arith.constant 0 : index
    %c0_11 = arith.constant 0 : index
    %c0_12 = arith.constant 0 : index
    %12 = vector.load %arg5[%c0_10, %c0_11, %c0_12] : memref<1x6x1xf32, #tpu.memory_space<vmem>>, vector<1x6x1xf32>
    %13 = vector.shape_cast %12 : vector<1x6x1xf32> to vector<6x1xf32>
    %14 = arith.mulf %3, %3 : vector<6x128xf32>
    %cst_13 = arith.constant dense<0.000000e+00> : vector<6xf32>
    %15 = vector.multi_reduction <add>, %14, %cst_13 [1] : vector<6x128xf32> to vector<6xf32>
    %16 = vector.shape_cast %15 : vector<6xf32> to vector<6x1xf32>
    %17 = arith.addf %13, %16 : vector<6x1xf32>
    %c0_14 = arith.constant 0 : index
    %c0_15 = arith.constant 0 : index
    %c0_16 = arith.constant 0 : index
    %18 = vector.load %arg5[%c0_14, %c0_15, %c0_16] : memref<1x6x1xf32, #tpu.memory_space<vmem>>, vector<1x6x1xf32>
    %19 = vector.shape_cast %18 : vector<1x6x1xf32> to vector<6x1xf32>
    %20 = vector.shape_cast %17 : vector<6x1xf32> to vector<1x6x1xf32>
    tpu.vector_store %arg5[%c0_14, %c0_15, %c0_16], %20 {strides = array<i32>} : memref<1x6x1xf32, #tpu.memory_space<vmem>>, vector<1x6x1xf32>,
    %c0_17 = arith.constant 0 : index
    %c0_18 = arith.constant 0 : index
    %c0_19 = arith.constant 0 : index
    %21 = vector.load %arg6[%c0_17, %c0_18, %c0_19] : memref<1x6x1xf32, #tpu.memory_space<vmem>>, vector<1x6x1xf32>
    %22 = vector.shape_cast %21 : vector<1x6x1xf32> to vector<6x1xf32>
    %23 = arith.mulf %4, %4 : vector<6x128xf32>
    %cst_20 = arith.constant dense<0.000000e+00> : vector<6xf32>
    %24 = vector.multi_reduction <add>, %23, %cst_20 [1] : vector<6x128xf32> to vector<6xf32>
    %25 = vector.shape_cast %24 : vector<6xf32> to vector<6x1xf32>
    %26 = arith.addf %22, %25 : vector<6x1xf32>
    %c0_21 = arith.constant 0 : index
    %c0_22 = arith.constant 0 : index
    %c0_23 = arith.constant 0 : index
    %27 = vector.load %arg6[%c0_21, %c0_22, %c0_23] : memref<1x6x1xf32, #tpu.memory_space<vmem>>, vector<1x6x1xf32>
    %28 = vector.shape_cast %27 : vector<1x6x1xf32> to vector<6x1xf32>
    %29 = vector.shape_cast %26 : vector<6x1xf32> to vector<1x6x1xf32>
    tpu.vector_store %arg6[%c0_21, %c0_22, %c0_23], %29 {strides = array<i32>} : memref<1x6x1xf32, #tpu.memory_space<vmem>>, vector<1x6x1xf32>,
    return
  }
  func.func @transform_0(%arg0: i32, %arg1: i32) -> (i32, i32) {
    %c0_i32 = arith.constant 0 : i32
    return %arg0, %arg1 : i32, i32
  }
  func.func @transform_1(%arg0: i32, %arg1: i32) -> (i32, i32) {
    %c0_i32 = arith.constant 0 : i32
    return %arg0, %arg1 : i32, i32
  }
  func.func @transform_2(%arg0: i32, %arg1: i32) -> (i32, i32, i32) {
    %c0_i32 = arith.constant 0 : i32
    %c0_i32_0 = arith.constant 0 : i32
    %c0_i32_1 = arith.constant 0 : i32
    return %arg0, %c0_i32, %c0_i32_0 : i32, i32, i32
  }
  func.func @transform_3(%arg0: i32, %arg1: i32) -> (i32, i32, i32) {
    %c0_i32 = arith.constant 0 : i32
    %c0_i32_0 = arith.constant 0 : i32
    %c0_i32_1 = arith.constant 0 : i32
    return %arg0, %c0_i32, %c0_i32_0 : i32, i32, i32
  }
  func.func @transform_4(%arg0: i32, %arg1: i32) -> (i32, i32, i32) {
    %c0_i32 = arith.constant 0 : i32
    %c0_i32_0 = arith.constant 0 : i32
    %c0_i32_1 = arith.constant 0 : i32
    return %arg0, %c0_i32, %c0_i32_0 : i32, i32, i32
  }
}

</mosaic_0001>

<bundles_post_ra>
// kernel: tpu_custom_call.1
= control target key start
LH: loop header
LB: loop body
LE: loop exit
PB: predicated region body
PF: predicated region fallthrough
CT: control target
= control target key end

     0   :  { %10 = vsyncpa [#allocation3], 0  ;;  %s227_s0 = inlined_call_operand.hbm [shape: f32[6,128], index: 0, kind: input, shape index: {}]   ;;  %s228_s1 = inlined_call_operand.hbm [shape: f32[6,128], index: 1, kind: input, shape index: {}]   ;;  %s229_s2 = inlined_call_operand.vmem [shape: f32[1,6,6], index: 2, kind: output, shape index: {0}]   ;;  %s230_s3 = inlined_call_operand.vmem [shape: f32[1,6,1], index: 3, kind: output, shape index: {1}]   ;;  %s231_s4 = inlined_call_operand.vmem [shape: f32[1,6,1], index: 4, kind: output, shape index: {2}]  }
   0x1   :  { %s17_s17 = sshll.u32 %s227_s0, 4  ;;  %s18_s17 = int_to_ptr.hbm [resolvable:$true] %s17_s17 }
   0x2   :  { %11 = vsyncpa [#allocation5], 0  ;;  %s162_s18 = smov [#allocation2]   ;;  %s28_s22 = sshll.u32 %s228_s1, 4  ;;  %s29_s22 = int_to_ptr.hbm [resolvable:$true] %s28_s22 }
   0x3   :  { %s19_s19 = sshll.u32 %s162_s18, 4  ;;  %s163_s23 = smov [#allocation4]   ;;  %s20_s19 = int_to_ptr.vmem [resolvable:$true] %s19_s19 }
   0x4   :  { %22 = dma.hbm_to_vmem [thread:$0]  %s18_s17, 128, %s20_s19, [#allocation3]  }
   0x5   :  { %s30_s24 = sshll.u32 %s163_s23, 4  ;;  %s31_s24 = int_to_ptr.vmem [resolvable:$true] %s30_s24 }
   0x6   :  { %33 = dma.hbm_to_vmem [thread:$0]  %s29_s22, 128, %s31_s24, [#allocation5]  }
   0x7   :  { %158 = dma.done.wait [#allocation3], 128  }
   0x8   :  { %159 = vsyncadd [#allocation3], 4294967168 }
   0x9   :  { %160 = dma.done.wait [#allocation5], 128  }
   0xa   :  { %161 = vsyncadd [#allocation5], 4294967168  ;;  %vm48_vm0 = vcmask 5120   ;;  %v164_v0 = vmov 0.0   ;;  %v52_v1 = vld [vmem:[#allocation4] sm:$0x3f] }
   0xb   :  { %49 = vst.msk [vmem:[%s230_s3] sm:$0x3f] %vm48_vm0, %v164_v0  ;;  %v51_v2 = vld [vmem:[#allocation2] sm:$0x3f]  ;;  %vm79_vm1 = vcmask 1045504   ;;  %69 = vmatpush.xpose.msra.mxu0 %v52_v1  ;;  %v87_v5 = vmul.f32 %v52_v1, %v52_v1  ;;  %vm46_vm2 = vcmask 46080  }
   0xc   :  { %50 = vst.msk [vmem:[%s231_s4] sm:$0x3f] %vm48_vm0, %v164_v0  ;;  %v78_v3 = vmul.f32 %v51_v2, %v51_v2 }
   0xd   :  { %v88_v6 = vsel %vm79_vm1, %v87_v5, 0.0  ;;  %47 = vst.msk [vmem:[%s229_s2] sm:$0x3f] %vm46_vm2, %v164_v0 }
   0xe   :  { %v80_v4 = vsel %vm79_vm1, %v78_v3, 0.0  ;;  %70 = vmatmul.f32.vlgmr.msra.gmra.mxu0 %v51_v2 }
   0xf   :  { %81 = vadd.xlane.f32.xlu0 %v80_v4 }
  0x12   :  { %v77_v7 = vld [vmem:[%s230_s3] sm:$0x3f] }
  0x13   :  { %v86_v10 = vld [vmem:[%s231_s4] sm:$0x3f] }
  0x14   :  { %v53_v12 = vld [vmem:[%s229_s2] sm:$0x3f] }
  0x17   :  { %89 = vadd.xlane.f32.xlu0 %v88_v6 }
  0x82   :  { %v82_v8 = vpop.xlane.xlu0 %81 }
  0x83   :  { %v83_v9 = vadd.f32 %v82_v8, %v77_v7 }
  0x85   :  { %85 = vst.msk [vmem:[%s230_s3] sm:$0x3f] %vm48_vm0, %v83_v9 }
  0x8a   :  { %v90_v11 = vpop.xlane.xlu0 %89 }
  0x8b   :  { %v91_v13 = vadd.f32 %v90_v11, %v86_v10  ;;  %v71_v14 = vpop.f32.mrf.mxu0 }
  0x8c   :  { %v74_v15 = vadd.f32 %v71_v14, %v53_v12 }
  0x8d   :  { %92 = vst.msk [vmem:[%s231_s4] sm:$0x3f] %vm48_vm0, %v91_v13 }
  0x8e   :  { %76 = vst.msk [vmem:[%s229_s2] sm:$0x3f] %vm46_vm2, %v74_v15 }
  0x8f   :  { %105 = vsyncpa [#allocation3], 1 }
  0x90   :  { %106 = vsyncpa [#allocation5], 1 }

</bundles_post_ra>
